<compile_context>
chip_gen: v6e
topology: v6e:2x2x1
jax: 0.10.0
libtpu: 0.0.40
codegen_flags: <defaults>
</compile_context>

<pallas_src>
import functools

import jax
import jax.numpy as jnp
from jax.experimental import pallas as pl
from jax.experimental.pallas import tpu as pltpu

_LANES = 128
_SUBLANES = 8
_MAX_BLOCK_ROWS = 1024   # (1024, 128) f32 block = 512 KiB per input buffer


def _weighted_l1_kernel(out_ref, tgt_ref, res_ref, acc_abs, acc_nz,
                        *, weight_factor, n_real, rows, block_rows):
    i = pl.program_id(0)
    last = pl.num_programs(0) - 1

    @pl.when(i == 0)
    def _():
        acc_abs[...] = jnp.zeros_like(acc_abs)
        acc_nz[...] = jnp.zeros_like(acc_nz)

    o = out_ref[...].astype(jnp.float32)
    t = tgt_ref[...].astype(jnp.float32)

    abs_diff = jnp.abs(o - t)
    nz = (t != 0).astype(jnp.float32)

    # Static check: does any block window extend past the real row count?
    if rows % block_rows != 0:
        row_idx = (i * block_rows
                   + jax.lax.broadcasted_iota(
                       jnp.int32, (block_rows, _LANES), 0))
        valid = row_idx < rows
        abs_diff = jnp.where(valid, abs_diff, jnp.float32(0.0))
        nz = jnp.where(valid, nz, jnp.float32(0.0))

    # Vector accumulation: pure VPU elementwise adds, hidden under the DMA.
    acc_abs[...] += abs_diff
    acc_nz[...] += nz

    @pl.when(i == last)
    def _():
        abs_total = jnp.sum(acc_abs[...])
        nz_total = jnp.sum(acc_nz[...])
        # mean(weight_mask) = (N + (wf - 1) * count_nonzero) / N
        mask_mean = (jnp.float32(n_real)
                     + jnp.float32(weight_factor - 1.0) * nz_total
                     ) / jnp.float32(n_real)
        res_ref[0, 0] = abs_total * mask_mean


def weighted_l1_loss(output, target, weight_factor=10.0):
    assert output.shape == target.shape
    n_real = output.size
    if n_real == 0:
        # torch: mean of an empty tensor is NaN.
        return jnp.float32(jnp.nan)

    out_flat = output.reshape(-1)
    tgt_flat = target.reshape(-1)

    # Only pad (with zeros) when numel is not a multiple of 128; padded zeros
    # contribute nothing to either partial sum, so no correction is needed.
    lane_pad = (-n_real) % _LANES
    if lane_pad:
        out_flat = jnp.pad(out_flat, (0, lane_pad))
        tgt_flat = jnp.pad(tgt_flat, (0, lane_pad))

    rows = (n_real + lane_pad) // _LANES
    out2d = out_flat.reshape(rows, _LANES)
    tgt2d = tgt_flat.reshape(rows, _LANES)

    # Biggest tile that fits comfortably in scoped VMEM on all generations:
    # 2 inputs x 2 buffers x 512 KiB + 2 accumulators x 512 KiB ~= 3 MiB.
    rows_rounded = ((rows + _SUBLANES - 1) // _SUBLANES) * _SUBLANES
    block_rows = min(_MAX_BLOCK_ROWS, rows_rounded)
    grid = (pl.cdiv(rows, block_rows),)

    kernel = functools.partial(
        _weighted_l1_kernel,
        weight_factor=float(weight_factor),
        n_real=int(n_real),
        rows=int(rows),
        block_rows=int(block_rows),
    )

    res = pl.pallas_call(
        kernel,
        out_shape=jax.ShapeDtypeStruct((1, 1), jnp.float32),
        grid_spec=pltpu.PrefetchScalarGridSpec(
            num_scalar_prefetch=0,
            grid=grid,
            in_specs=[
                pl.BlockSpec((block_rows, _LANES), lambda i: (i, 0)),
                pl.BlockSpec((block_rows, _LANES), lambda i: (i, 0)),
            ],
            out_specs=pl.BlockSpec(memory_space=pltpu.SMEM),
            scratch_shapes=[
                pltpu.VMEM((block_rows, _LANES), jnp.float32),
                pltpu.VMEM((block_rows, _LANES), jnp.float32),
            ],
        ),
        compiler_params=pltpu.CompilerParams(
            dimension_semantics=("arbitrary",)),
    )(out2d, tgt2d)

    return res[0, 0]


def _reference(output, target, weight_factor=10.0):
    o = output.astype(jnp.float32)
    t = target.astype(jnp.float32)
    loss = jnp.sum(jnp.abs(o - t))
    mask = jnp.where(t != 0, jnp.float32(weight_factor), jnp.float32(1.0))
    return jnp.mean(loss * mask)


if __name__ == "__main__":
    key = jax.random.PRNGKey(0)
    k1, k2, k3 = jax.random.split(key, 3)

    # Small NCHW-like tensors (dense gaze / heatmap regression target).
    shape = (2, 4, 16, 16)
    output = jax.random.normal(k1, shape, dtype=jnp.float32)
    target = jax.random.normal(k2, shape, dtype=jnp.float32)
    # Make some target entries exactly zero so the weight mask is non-trivial.
    zero_mask = jax.random.bernoulli(k3, p=0.5, shape=shape)
    target = jnp.where(zero_mask, jnp.float32(0.0), target)

    got = jax.block_until_ready(weighted_l1_loss(output, target, 10.0))
    want = jax.block_until_ready(_reference(output, target, 10.0))

    # f32 full-array reduction: allow a small relative tolerance for
    # reduction-order differences vs the XLA reference.
    assert jnp.allclose(got, want, rtol=1e-4, atol=1e-4), (got, want)
    print("KERNEL_OK")
</pallas_src>

<mosaic_0001>
module attributes {stable_mosaic.version = 11 : i64} {
  func.func @_weighted_l1_kernel(%arg0: i32, %arg1: memref<16x128xf32, #tpu.memory_space<vmem>>, %arg2: memref<16x128xf32, #tpu.memory_space<vmem>>, %arg3: memref<1x1xf32, #tpu.memory_space<smem>>, %arg4: memref<16x128xf32, #tpu.memory_space<vmem>>, %arg5: memref<16x128xf32, #tpu.memory_space<vmem>>) attributes {dimension_semantics = [#tpu.dimension_semantics<arbitrary>], iteration_bounds = array<i64: 1>, scalar_prefetch = 0 : i64, scratch_operands = 2 : i64, tpu.core_type = #tpu.core_type<tc>, window_params = [{transform_indices = @transform_0, window_bounds = array<i64: 16, 128>}, {transform_indices = @transform_1, window_bounds = array<i64: 16, 128>}, {transform_indices = @transform_2, window_bounds = array<i64: 1, 1>}]} {
    %c0_i32 = arith.constant 0 : i32
    %0 = arith.cmpi eq, %arg0, %c0_i32 : i32
    %1 = arith.extui %0 : i1 to i32
    %c0_i32_0 = arith.constant 0 : i32
    %2 = arith.cmpi ne, %1, %c0_i32_0 : i32
    scf.if %2 {
      %cst_14 = arith.constant 0.000000e+00 : f32
      %20 = vector.broadcast %cst_14 : f32 to vector<16x128xf32>
      %c0_15 = arith.constant 0 : index
      %c0_16 = arith.constant 0 : index
      %21 = vector.load %arg4[%c0_15, %c0_16] : memref<16x128xf32, #tpu.memory_space<vmem>>, vector<16x128xf32>
      tpu.vector_store %arg4[%c0_15, %c0_16], %20 {strides = array<i32>} : memref<16x128xf32, #tpu.memory_space<vmem>>, vector<16x128xf32>,
      %cst_17 = arith.constant 0.000000e+00 : f32
      %22 = vector.broadcast %cst_17 : f32 to vector<16x128xf32>
      %c0_18 = arith.constant 0 : index
      %c0_19 = arith.constant 0 : index
      %23 = vector.load %arg5[%c0_18, %c0_19] : memref<16x128xf32, #tpu.memory_space<vmem>>, vector<16x128xf32>
      tpu.vector_store %arg5[%c0_18, %c0_19], %22 {strides = array<i32>} : memref<16x128xf32, #tpu.memory_space<vmem>>, vector<16x128xf32>,
    } else {
    }
    %c0 = arith.constant 0 : index
    %c0_1 = arith.constant 0 : index
    %3 = vector.load %arg1[%c0, %c0_1] : memref<16x128xf32, #tpu.memory_space<vmem>>, vector<16x128xf32>
    %c0_2 = arith.constant 0 : index
    %c0_3 = arith.constant 0 : index
    %4 = vector.load %arg2[%c0_2, %c0_3] : memref<16x128xf32, #tpu.memory_space<vmem>>, vector<16x128xf32>
    %5 = arith.subf %3, %4 : vector<16x128xf32>
    %6 = math.absf %5 : vector<16x128xf32>
    %cst = arith.constant 0.000000e+00 : f32
    %7 = vector.broadcast %cst : f32 to vector<16x128xf32>
    %8 = arith.cmpf one, %4, %7 : vector<16x128xf32>
    %9 = arith.extui %8 : vector<16x128xi1> to vector<16x128xi32>
    %10 = arith.sitofp %9 : vector<16x128xi32> to vector<16x128xf32>
    %c0_4 = arith.constant 0 : index
    %c0_5 = arith.constant 0 : index
    %11 = vector.load %arg4[%c0_4, %c0_5] : memref<16x128xf32, #tpu.memory_space<vmem>>, vector<16x128xf32>
    %12 = arith.addf %11, %6 : vector<16x128xf32>
    %c0_6 = arith.constant 0 : index
    %c0_7 = arith.constant 0 : index
    %13 = vector.load %arg4[%c0_6, %c0_7] : memref<16x128xf32, #tpu.memory_space<vmem>>, vector<16x128xf32>
    tpu.vector_store %arg4[%c0_6, %c0_7], %12 {strides = array<i32>} : memref<16x128xf32, #tpu.memory_space<vmem>>, vector<16x128xf32>,
    %c0_8 = arith.constant 0 : index
    %c0_9 = arith.constant 0 : index
    %14 = vector.load %arg5[%c0_8, %c0_9] : memref<16x128xf32, #tpu.memory_space<vmem>>, vector<16x128xf32>
    %15 = arith.addf %14, %10 : vector<16x128xf32>
    %c0_10 = arith.constant 0 : index
    %c0_11 = arith.constant 0 : index
    %16 = vector.load %arg5[%c0_10, %c0_11] : memref<16x128xf32, #tpu.memory_space<vmem>>, vector<16x128xf32>
    tpu.vector_store %arg5[%c0_10, %c0_11], %15 {strides = array<i32>} : memref<16x128xf32, #tpu.memory_space<vmem>>, vector<16x128xf32>,
    %c0_i32_12 = arith.constant 0 : i32
    %17 = arith.cmpi eq, %arg0, %c0_i32_12 : i32
    %18 = arith.extui %17 : i1 to i32
    %c0_i32_13 = arith.constant 0 : i32
    %19 = arith.cmpi ne, %18, %c0_i32_13 : i32
    scf.if %19 {
      %c0_14 = arith.constant 0 : index
      %c0_15 = arith.constant 0 : index
      %20 = vector.load %arg4[%c0_14, %c0_15] : memref<16x128xf32, #tpu.memory_space<vmem>>, vector<16x128xf32>
      %21 = vector.shape_cast %20 : vector<16x128xf32> to vector<1x16x128xf32>
      %cst_16 = arith.constant dense<0.000000e+00> : vector<1xf32>
      %22 = vector.multi_reduction <add>, %21, %cst_16 [1, 2] : vector<1x16x128xf32> to vector<1xf32>
      %23 = vector.shape_cast %22 : vector<1xf32> to vector<1x1x1xf32>
      %24 = vector.extract %23[0, 0, 0] : f32 from vector<1x1x1xf32>
      %c0_17 = arith.constant 0 : index
      %c0_18 = arith.constant 0 : index
      %25 = vector.load %arg5[%c0_17, %c0_18] : memref<16x128xf32, #tpu.memory_space<vmem>>, vector<16x128xf32>
      %26 = vector.shape_cast %25 : vector<16x128xf32> to vector<1x16x128xf32>
      %cst_19 = arith.constant dense<0.000000e+00> : vector<1xf32>
      %27 = vector.multi_reduction <add>, %26, %cst_19 [1, 2] : vector<1x16x128xf32> to vector<1xf32>
      %28 = vector.shape_cast %27 : vector<1xf32> to vector<1x1x1xf32>
      %29 = vector.extract %28[0, 0, 0] : f32 from vector<1x1x1xf32>
      %cst_20 = arith.constant 9.000000e+00 : f32
      %30 = arith.mulf %cst_20, %29 : f32
      %cst_21 = arith.constant 2.048000e+03 : f32
      %31 = arith.addf %cst_21, %30 : f32
      %cst_22 = arith.constant 2.048000e+03 : f32
      %32 = arith.divf %31, %cst_22 : f32
      %33 = arith.mulf %24, %32 : f32
      %c0_23 = arith.constant 0 : index
      %c0_24 = arith.constant 0 : index
      %34 = memref.load %arg3[%c0_23, %c0_24] : memref<1x1xf32, #tpu.memory_space<smem>>
      memref.store %33, %arg3[%c0_23, %c0_24] : memref<1x1xf32, #tpu.memory_space<smem>>
    } else {
    }
    return
  }
  func.func @transform_0(%arg0: i32) -> (i32, i32) {
    %c0_i32 = arith.constant 0 : i32
    %c0_i32_0 = arith.constant 0 : i32
    return %arg0, %c0_i32 : i32, i32
  }
  func.func @transform_1(%arg0: i32) -> (i32, i32) {
    %c0_i32 = arith.constant 0 : i32
    %c0_i32_0 = arith.constant 0 : i32
    return %arg0, %c0_i32 : i32, i32
  }
  func.func @transform_2(%arg0: i32) -> (i32, i32) {
    %c0_i32 = arith.constant 0 : i32
    %c0_i32_0 = arith.constant 0 : i32
    %c0_i32_1 = arith.constant 0 : i32
    return %c0_i32, %c0_i32_0 : i32, i32
  }
}

</mosaic_0001>

<bundles_post_ra>
// kernel: tpu_custom_call.1
= control target key start
LH: loop header
LB: loop body
LE: loop exit
PB: predicated region body
PF: predicated region fallthrough
CT: control target
= control target key end

     0   :  { %7 = vsyncpa [#allocation5], 0  ;;  %s220_s0 = inlined_call_operand.hbm [shape: f32[16,128], index: 0, kind: input, shape index: {}]   ;;  %s221_s1 = inlined_call_operand.hbm [shape: f32[16,128], index: 1, kind: input, shape index: {}]   ;;  %s222_s2 = inlined_call_operand.hbm [shape: f32[1,1], index: 2, kind: output, shape index: {}]  }
   0x1   :  { %8 = vsyncpa [#allocation8], 0 }
   0x2   :  { %9 = vsyncpa [#allocation6], 0  ;;  %s190_s9 = smov [#allocation4]  }
   0x3   :  { %s15_s10 = sshll.u32 %s190_s9, 4  ;;  %s16_s10 = int_to_ptr.vmem [resolvable:$true] %s15_s10 }
   0x4   :  { %s144_s11 = scalar_lea.vmem %s16_s10, 256  ;;  %p149_p1 = scmp.lt.s32.totalorder %s16_s10, %s16_s10 }
   0x5   :  { %p145_p0 = scmp.ne.s32.totalorder %s16_s10, %s144_s11  ;;  %p150_p2 = scmp.lt.s32.totalorder %s144_s11, %s144_s11 }
   0x7   :  { %p151_p3 = por %p150_p2, %p149_p1 }
   0x9   :  { %p152_p4 = pnand %p151_p3, %p145_p0 }
   0xb   :  { %155 = shalt.err (!%p152_p4)
}
   0xc   :  { %s191_s12 = smov 128   ;;  %s192_s13 = smov 8  }
   0xd   :  { %21 = dma.hbm_to_vmem [thread:$0]  %s220_s0, 256, %s16_s10, [#allocation5], %s191_s12, %s191_s12, %s192_s13  }
   0xe   :  { %s193_s16 = smov [#allocation7]  }
   0xf   :  { %s27_s17 = sshll.u32 %s193_s16, 4  ;;  %s28_s17 = int_to_ptr.vmem [resolvable:$true] %s27_s17 }
  0x10   :  { %s164_s18 = scalar_lea.vmem %s28_s17, 256  ;;  %p169_p6 = scmp.lt.s32.totalorder %s28_s17, %s28_s17 }
  0x11   :  { %p165_p5 = scmp.ne.s32.totalorder %s28_s17, %s164_s18  ;;  %p170_p7 = scmp.lt.s32.totalorder %s164_s18, %s164_s18 }
  0x13   :  { %p171_p8 = por %p170_p7, %p169_p6 }
  0x15   :  { %p172_p9 = pnand %p171_p8, %p165_p5 }
  0x17   :  { %175 = shalt.err (!%p172_p9)
}
  0x18   :  { %33 = dma.hbm_to_vmem [thread:$0]  %s221_s1, 256, %s28_s17, [#allocation8], %s191_s12, %s191_s12, %s192_s13  }
  0x19   :  { %184 = dma.done.wait [#allocation5], 256  }
  0x1a   :  { %185 = vsyncadd [#allocation5], 4294967040 }
  0x1b   :  { %186 = dma.done.wait [#allocation8], 256  }
  0x1c   :  { %187 = vsyncadd [#allocation8], 4294967040  ;;  %v48_v0 = vld [vmem:[#allocation4] sm:$0xff]  ;;  %v49_v1 = vld [vmem:[#allocation4 + $0x8] sm:$0xff]  ;;  %v194_v8 = vmov 0.0   ;;  %s195_s25 = smov [#allocation9]  }
  0x1d   :  { %v50_v2 = vld [vmem:[#allocation7] sm:$0xff]  ;;  %v51_v3 = vld [vmem:[#allocation7 + $0x8] sm:$0xff] }
  0x1e   :  { %v52_v4 = vsub.f32 %v48_v0, %v50_v2  ;;  %v53_v5 = vsub.f32 %v49_v1, %v51_v3  ;;  %vm56_vm0 = vcmp.ne.f32.partialorder %v50_v2, 0.0  ;;  %vm57_vm1 = vcmp.ne.f32.partialorder %v51_v3, 0.0 }
  0x1f   :  { %v124_v9 = vsel %vm56_vm0, 1.0, %v194_v8  ;;  %v125_v10 = vsel %vm57_vm1, 1.0, %v194_v8 }
  0x20   :  { %v54_v6 = vand.u32 2147483647, %v52_v4  ;;  %v55_v7 = vand.u32 2147483647, %v53_v5  ;;  %v91_v12 = vadd.f32 %v125_v10, %v124_v9 }
  0x22   :  { %v79_v11 = vadd.f32 %v55_v7, %v54_v6 }
  0x24   :  { %80 = vadd.xlane.f32.xlu0 %v79_v11 }
  0x28   :  { %92 = vadd.xlane.f32.xlu0 %v91_v12 }
  0xad   :  { %v81_v13 = vpop.xlane.xlu0 %80 }
  0xae   :  { %v82_v14 = vrot.slane %v81_v13, 4 }
  0xb0   :  { %v83_v15 = vadd.f32 %v82_v14, %v81_v13 }
  0xb1   :  { %v93_v16 = vpop.xlane.xlu0 %92 }
  0xb2   :  { %v84_v17 = vrot.slane %v83_v15, 2  ;;  %v94_v18 = vrot.slane %v93_v16, 4 }
  0xb4   :  { %v95_v19 = vadd.f32 %v94_v18, %v93_v16  ;;  %v85_v20 = vadd.f32 %v84_v17, %v83_v15 }
  0xb6   :  { %v96_v21 = vrot.slane %v95_v19, 2  ;;  %v86_v22 = vrot.slane %v85_v20, 1 }
  0xb8   :  { %v97_v23 = vadd.f32 %v96_v21, %v95_v19  ;;  %v87_v24 = vadd.f32 %v86_v22, %v85_v20 }
  0xba   :  { %126 = vpush %v87_v24  ;;  %v98_v25 = vrot.slane %v97_v23, 1 }
  0xbc   :  { %v99_v26 = vadd.f32 %v98_v25, %v97_v23 }
  0xbe   :  { %128 = vpush %v99_v26 }
  0xeb   :  { %s127_s0 = spop %126 }
  0xef   :  { %s129_s1 = spop %128 }
  0xf0   :  { %s101_s21 = smul.f32 9.0, %s129_s1 }
  0xf2   :  { %s102_s22 = sadd.f32 2048.0, %s101_s21 }
  0xf4   :  { %s105_s23 = smul.f32 0.00048828125, %s102_s22 }
  0xf6   :  { %s106_s24 = smul.f32 %s127_s0, %s105_s23 }
  0xf8   :  { %108 = sst [smem:[#allocation9]] %s106_s24 }
  0xf9   :  { %116 = dma.smem_to_hbm %s195_s25, 16, %s222_s2, [#allocation6]  }
  0xfa   :  { %188 = dma.done.wait [#allocation6], 16  }
  0xfb   :  { %189 = vsyncadd [#allocation6], 4294967280 }
  0xfc   :  { %120 = sfence }
  0xfd   :  { %121 = vsyncpa [#allocation5], 1 }
  0xfe   :  { %122 = vsyncpa [#allocation8], 1 }
  0xff   :  { %123 = vsyncpa [#allocation6], 1 }

</bundles_post_ra>
